<compile_context>
chip_gen: v7x
topology: tpu7x:2x2x1
jax: 0.10.0
libtpu: 0.0.40
codegen_flags: <defaults>
</compile_context>

<pallas_src>
import functools

import jax
import jax.numpy as jnp
import numpy as np
from jax import lax
from jax.experimental import pallas as pl
from jax.experimental.pallas import tpu as pltpu

_LANES = 128


def _lstm_tagger_kernel(
    ids_f_ref,      # VMEM (T, 1) int32 token ids (forward time order)
    ids_b_ref,      # VMEM (T, 1) int32 Vpad + reversed token ids
    gtab_ref,       # VMEM (2*Vpad, G) stacked fwd/bwd (emb @ W_in) table
    b_in_ref,       # VMEM (1, G) fused bias (b_ih + b_hh, both directions)
    w_hh_ref,       # VMEM (HF, G) block-diagonal fused recurrent weights
    w_tag_ref,      # VMEM (HF, CPAD) tag projection (zero-padded lanes >= C)
    b_tag_ref,      # VMEM (1, CPAD)
    out_ref,        # VMEM (T, CPAD) log-softmax scores (first n_tags lanes valid)
    gx_scratch,     # VMEM (T, G) direction-selected input-projected gates
    hid_scratch,    # VMEM (T, HF) per-step fused hidden states
    *,
    n_tags,
    hidden_per_dir,
):
    T = out_ref.shape[0]
    HF = w_hh_ref.shape[0]          # fused hidden width = 2 * H2
    H2 = hidden_per_dir
    G = gx_scratch.shape[1]         # 4 * HF gate lanes
    K = gtab_ref.shape[0]           # 2 * Vpad

    # ---- fused embedding gather + input projection + direction select:
    #      ONE one-hot MXU matmul (T, 2*Vpad) x (2*Vpad, G) -----------------
    col = lax.broadcasted_iota(jnp.int32, (T, K), 1)
    onehot = (
        (col == ids_f_ref[...]).astype(jnp.float32)
        + (col == ids_b_ref[...]).astype(jnp.float32)
    )
    gx_scratch[...] = (
        jnp.dot(onehot, gtab_ref[...], preferred_element_type=jnp.float32)
        + b_in_ref[...]
    )

    w_hh = w_hh_ref[...]

    # ---- fused fwd+bwd recurrence: T strictly serial steps -----------------
    def step(s, carry):
        h, c = carry                                  # each (1, HF)
        gx = gx_scratch[pl.ds(s, 1), :]               # already direction-selected
        g = gx + jnp.dot(h, w_hh, preferred_element_type=jnp.float32)

        # sigmoid(x) = 0.5 * tanh(0.5 x) + 0.5  (single full-vreg EUP op)
        sg = 0.5 * jnp.tanh(0.5 * g) + 0.5
        i_g = sg[:, 0:HF]
        f_g = sg[:, HF:2 * HF]
        o_g = sg[:, 3 * HF:4 * HF]
        g_g = jnp.tanh(g[:, 2 * HF:3 * HF])

        c_new = f_g * c + i_g * g_g
        h_new = o_g * jnp.tanh(c_new)

        # Single full-width store per step (bwd half is un-reversed post-loop).
        hid_scratch[pl.ds(s, 1), :] = h_new
        return h_new, c_new

    zeros = jnp.zeros((1, HF), jnp.float32)
    lax.fori_loop(0, T, step, (zeros, zeros), unroll=True)

    # ---- post-loop fixup: time-reverse the backward half -------------------
    hid_all = hid_scratch[...]                        # (T, HF)
    r = lax.broadcasted_iota(jnp.int32, (T, T), 0)
    cc = lax.broadcasted_iota(jnp.int32, (T, T), 1)
    rev_p = (r + cc == T - 1).astype(jnp.float32)     # reverse permutation
    hid_rev = jnp.dot(rev_p, hid_all, preferred_element_type=jnp.float32)
    lane_h = lax.broadcasted_iota(jnp.int32, (T, HF), 1)
    hid = jnp.where(lane_h < H2, hid_all, hid_rev)

    # ---- lane-dense tag projection + masked, stable log-softmax ------------
    tag = (
        jnp.dot(hid, w_tag_ref[...], preferred_element_type=jnp.float32)
        + b_tag_ref[...]
    )
    out_lane = lax.broadcasted_iota(jnp.int32, tag.shape, 1)
    valid = out_lane < n_tags
    m = jnp.max(jnp.where(valid, tag, -1e30), axis=1, keepdims=True)
    z = tag - m
    ez = jnp.where(valid, jnp.exp(z), 0.0)
    lse = jnp.log(jnp.sum(ez, axis=1, keepdims=True))
    out_ref[...] = z - lse


def lstm_tagger_forward(sentence, params):
    """Whole tagger forward in one pallas_call (gather + biLSTM + linear + log_softmax)."""
    emb_table = params["embedding"].astype(jnp.float32)           # (V, E)
    V, _E = emb_table.shape
    T = sentence.shape[0]
    H2 = params["whh_f"].shape[1]                                 # hidden per direction
    HF = 2 * H2                                                   # fused hidden width
    G = 4 * HF                                                    # fused gate width
    C = params["wtag"].shape[0]
    CPAD = ((C + _LANES - 1) // _LANES) * _LANES                  # lane-dense output width
    VPAD = ((V + _LANES - 1) // _LANES) * _LANES                  # lane-dense one-hot width

    # PyTorch layout -> kernel layout (pre-transpose, fold the two biases).
    wih_f_t = params["wih_f"].T.astype(jnp.float32)               # (E, 4*H2) cols [i|f|g|o]
    wih_b_t = params["wih_b"].T.astype(jnp.float32)
    whh_f_t = params["whh_f"].T.astype(jnp.float32)               # (H2, 4*H2)
    whh_b_t = params["whh_b"].T.astype(jnp.float32)
    b_f = (params["bih_f"] + params["bhh_f"]).astype(jnp.float32)
    b_b = (params["bih_b"] + params["bhh_b"]).astype(jnp.float32)

    # Fused lane layout: gate-major, direction-interleaved:
    #   lanes [2*H2*k + 0 : 2*H2*k + H2)   = gate k, forward
    #   lanes [2*H2*k + H2 : 2*H2*(k+1))   = gate k, backward
    zero_hh = jnp.zeros((H2, H2), jnp.float32)
    in_cols, b_cols, hh_f_cols, hh_b_cols = [], [], [], []
    for k in range(4):
        sl = slice(k * H2, (k + 1) * H2)
        in_cols += [wih_f_t[:, sl], wih_b_t[:, sl]]
        b_cols += [b_f[sl], b_b[sl]]
        hh_f_cols += [whh_f_t[:, sl], zero_hh]
        hh_b_cols += [zero_hh, whh_b_t[:, sl]]
    w_in = jnp.concatenate(in_cols, axis=1)                       # (E, G)
    b_in = jnp.concatenate(b_cols).reshape(1, G)                  # (1, G)
    w_hh = jnp.concatenate(                                       # (HF, G) block-diagonal
        [jnp.concatenate(hh_f_cols, axis=1), jnp.concatenate(hh_b_cols, axis=1)],
        axis=0,
    )

    # Fold embedding into the input projection once (XLA-side, outside kernel),
    # then build the stacked fwd/bwd gather table for the one-hot matmul.
    g_table = emb_table @ w_in                                    # (V, G)
    lane = np.arange(G)
    is_bwd = ((lane // H2) % 2) == 1
    fwd_mask = jnp.asarray(~is_bwd, jnp.float32)[None, :]         # (1, G)
    bwd_mask = jnp.asarray(is_bwd, jnp.float32)[None, :]
    g_fwd = jnp.zeros((VPAD, G), jnp.float32).at[:V].set(g_table * fwd_mask)
    g_bwd = jnp.zeros((VPAD, G), jnp.float32).at[:V].set(g_table * bwd_mask)
    g_stacked = jnp.concatenate([g_fwd, g_bwd], axis=0)           # (2*VPAD, G)

    w_tag = jnp.zeros((HF, CPAD), jnp.float32).at[:, :C].set(params["wtag"].T.astype(jnp.float32))
    b_tag = jnp.zeros((1, CPAD), jnp.float32).at[:, :C].set(params["btag"].astype(jnp.float32))

    # Clamp ids (robustness); one-hot gather also makes OOB ids memory-safe.
    ids = jnp.clip(sentence.astype(jnp.int32), 0, V - 1)
    ids_f = ids.reshape(T, 1)                                     # forward time order
    ids_b = (VPAD + ids[::-1]).reshape(T, 1)                      # reversed, offset into bwd table

    vmem = pl.BlockSpec(memory_space=pltpu.MemorySpace.VMEM)

    out_padded = pl.pallas_call(
        functools.partial(_lstm_tagger_kernel, n_tags=C, hidden_per_dir=H2),
        out_shape=jax.ShapeDtypeStruct((T, CPAD), jnp.float32),
        in_specs=[vmem] * 7,
        out_specs=vmem,
        scratch_shapes=[
            pltpu.VMEM((T, G), jnp.float32),
            pltpu.VMEM((T, HF), jnp.float32),
        ],
    )(ids_f, ids_b, g_stacked, b_in, w_hh, w_tag, b_tag)
    return out_padded[:, :C]


def reference_forward(sentence, params):
    """Pure-JAX reference matching PyTorch nn.LSTM(bidirectional=True) semantics."""
    emb = params["embedding"][sentence].astype(jnp.float32)
    T = emb.shape[0]
    H2 = params["whh_f"].shape[1]

    def run_dir(xs, wih, whh, bih, bhh):
        h = jnp.zeros((H2,), jnp.float32)
        c = jnp.zeros((H2,), jnp.float32)
        hs = []
        for t in range(T):
            g = xs[t] @ wih.T + bih + h @ whh.T + bhh
            i = jax.nn.sigmoid(g[0:H2])
            f = jax.nn.sigmoid(g[H2:2 * H2])
            gg = jnp.tanh(g[2 * H2:3 * H2])
            o = jax.nn.sigmoid(g[3 * H2:4 * H2])
            c = f * c + i * gg
            h = o * jnp.tanh(c)
            hs.append(h)
        return jnp.stack(hs)

    hf = run_dir(emb, params["wih_f"], params["whh_f"], params["bih_f"], params["bhh_f"])
    hb = run_dir(emb[::-1], params["wih_b"], params["whh_b"], params["bih_b"], params["bhh_b"])[::-1]
    lstm_out = jnp.concatenate([hf, hb], axis=1)
    tag_space = lstm_out @ params["wtag"].T + params["btag"]
    return jax.nn.log_softmax(tag_space, axis=1)


def init_params(key, vocab_size, embedding_dim, hidden_dim, target_size):
    assert hidden_dim % 2 == 0
    H2 = hidden_dim // 2
    ks = jax.random.split(key, 12)
    s = 0.1  # small init keeps activations in the well-conditioned range
    return {
        "embedding": jax.random.normal(ks[0], (vocab_size, embedding_dim), jnp.float32),
        "wih_f": s * jax.random.normal(ks[1], (4 * H2, embedding_dim), jnp.float32),
        "whh_f": s * jax.random.normal(ks[2], (4 * H2, H2), jnp.float32),
        "bih_f": s * jax.random.normal(ks[3], (4 * H2,), jnp.float32),
        "bhh_f": s * jax.random.normal(ks[4], (4 * H2,), jnp.float32),
        "wih_b": s * jax.random.normal(ks[5], (4 * H2, embedding_dim), jnp.float32),
        "whh_b": s * jax.random.normal(ks[6], (4 * H2, H2), jnp.float32),
        "bih_b": s * jax.random.normal(ks[7], (4 * H2,), jnp.float32),
        "bhh_b": s * jax.random.normal(ks[8], (4 * H2,), jnp.float32),
        "wtag": s * jax.random.normal(ks[9], (target_size, hidden_dim), jnp.float32),
        "btag": s * jax.random.normal(ks[10], (target_size,), jnp.float32),
    }


if __name__ == "__main__":
    VOCAB, EMB_DIM, HIDDEN_DIM, TARGET_SIZE, SEQ_LEN = 50, 16, 32, 10, 8

    key = jax.random.PRNGKey(0)
    pkey, skey = jax.random.split(key)
    params = init_params(pkey, VOCAB, EMB_DIM, HIDDEN_DIM, TARGET_SIZE)
    sentence = jax.random.randint(skey, (SEQ_LEN,), 0, VOCAB, dtype=jnp.int32)

    out = lstm_tagger_forward(sentence, params)
    out = jax.block_until_ready(out)

    ref = jax.block_until_ready(reference_forward(sentence, params))
    np.testing.assert_allclose(np.asarray(out), np.asarray(ref), rtol=1e-2, atol=1e-2)
    assert out.shape == (SEQ_LEN, TARGET_SIZE)
    # rows of log_softmax must exp-sum to 1
    np.testing.assert_allclose(np.exp(np.asarray(out)).sum(axis=1), 1.0, rtol=1e-4, atol=1e-4)

    print("KERNEL_OK")
</pallas_src>

<mosaic_0001>
module attributes {stable_mosaic.version = 11 : i64} {
  func.func @_lstm_tagger_kernel(%arg0: memref<8x1xi32, #tpu.memory_space<vmem>>, %arg1: memref<8x1xi32, #tpu.memory_space<vmem>>, %arg2: memref<256x128xf32, #tpu.memory_space<vmem>>, %arg3: memref<1x128xf32, #tpu.memory_space<vmem>>, %arg4: memref<32x128xf32, #tpu.memory_space<vmem>>, %arg5: memref<32x128xf32, #tpu.memory_space<vmem>>, %arg6: memref<1x128xf32, #tpu.memory_space<vmem>>, %arg7: memref<8x128xf32, #tpu.memory_space<vmem>>, %arg8: memref<8x128xf32, #tpu.memory_space<vmem>>, %arg9: memref<8x32xf32, #tpu.memory_space<vmem>>) attributes {dimension_semantics = [], scalar_prefetch = 0 : i64, scratch_operands = 2 : i64, tpu.core_type = #tpu.core_type<tc>} {
    %0 = tpu.iota {dimensions = array<i32: 1>} : vector<8x256xi32>
    %c0 = arith.constant 0 : index
    %c0_0 = arith.constant 0 : index
    %1 = vector.load %arg0[%c0, %c0_0] : memref<8x1xi32, #tpu.memory_space<vmem>>, vector<8x1xi32>
    %2 = vector.broadcast %1 : vector<8x1xi32> to vector<8x256xi32>
    %3 = arith.cmpi eq, %0, %2 : vector<8x256xi32>
    %4 = arith.extui %3 : vector<8x256xi1> to vector<8x256xi32>
    %5 = arith.sitofp %4 : vector<8x256xi32> to vector<8x256xf32>
    %c0_1 = arith.constant 0 : index
    %c0_2 = arith.constant 0 : index
    %6 = vector.load %arg1[%c0_1, %c0_2] : memref<8x1xi32, #tpu.memory_space<vmem>>, vector<8x1xi32>
    %7 = vector.broadcast %6 : vector<8x1xi32> to vector<8x256xi32>
    %8 = arith.cmpi eq, %0, %7 : vector<8x256xi32>
    %9 = arith.extui %8 : vector<8x256xi1> to vector<8x256xi32>
    %10 = arith.sitofp %9 : vector<8x256xi32> to vector<8x256xf32>
    %11 = arith.addf %5, %10 : vector<8x256xf32>
    %c0_3 = arith.constant 0 : index
    %c0_4 = arith.constant 0 : index
    %12 = vector.load %arg2[%c0_3, %c0_4] : memref<256x128xf32, #tpu.memory_space<vmem>>, vector<256x128xf32>
    %cst = arith.constant dense<0.000000e+00> : vector<8x128xf32>
    %13 = tpu.matmul %11, %12, %cst {dimension_numbers = #tpu.dot_dimension_numbers<[1], [0], [0], [1], [0, 0, 1, 1], [], []>} : vector<8x256xf32>, vector<256x128xf32>, vector<8x128xf32> -> vector<8x128xf32>
    %c0_5 = arith.constant 0 : index
    %c0_6 = arith.constant 0 : index
    %14 = vector.load %arg3[%c0_5, %c0_6] : memref<1x128xf32, #tpu.memory_space<vmem>>, vector<1x128xf32>
    %15 = vector.broadcast %14 : vector<1x128xf32> to vector<8x128xf32>
    %16 = arith.addf %13, %15 : vector<8x128xf32>
    %c0_7 = arith.constant 0 : index
    %c0_8 = arith.constant 0 : index
    %17 = vector.load %arg8[%c0_7, %c0_8] : memref<8x128xf32, #tpu.memory_space<vmem>>, vector<8x128xf32>
    tpu.vector_store %arg8[%c0_7, %c0_8], %16 {strides = array<i32>} : memref<8x128xf32, #tpu.memory_space<vmem>>, vector<8x128xf32>,
    %c0_9 = arith.constant 0 : index
    %c0_10 = arith.constant 0 : index
    %18 = vector.load %arg4[%c0_9, %c0_10] : memref<32x128xf32, #tpu.memory_space<vmem>>, vector<32x128xf32>
    %cst_11 = arith.constant 0.000000e+00 : f32
    %19 = vector.broadcast %cst_11 : f32 to vector<1x32xf32>
    %c0_i32 = arith.constant 0 : i32
    %20 = arith.index_cast %c0_i32 : i32 to index
    %c0_12 = arith.constant 0 : index
    %21 = vector.load %arg8[%20, %c0_12] : memref<8x128xf32, #tpu.memory_space<vmem>>, vector<1x128xf32>
    %cst_13 = arith.constant dense<0.000000e+00> : vector<1x128xf32>
    %22 = tpu.matmul %19, %18, %cst_13 {dimension_numbers = #tpu.dot_dimension_numbers<[1], [0], [0], [1], [0, 0, 1, 1], [], []>} : vector<1x32xf32>, vector<32x128xf32>, vector<1x128xf32> -> vector<1x128xf32>
    %23 = arith.addf %21, %22 : vector<1x128xf32>
    %cst_14 = arith.constant 5.000000e-01 : f32
    %24 = vector.broadcast %cst_14 : f32 to vector<1x128xf32>
    %25 = arith.mulf %24, %23 : vector<1x128xf32>
    %26 = math.tanh %25 : vector<1x128xf32>
    %cst_15 = arith.constant 5.000000e-01 : f32
    %27 = vector.broadcast %cst_15 : f32 to vector<1x128xf32>
    %28 = arith.mulf %27, %26 : vector<1x128xf32>
    %cst_16 = arith.constant 5.000000e-01 : f32
    %29 = vector.broadcast %cst_16 : f32 to vector<1x128xf32>
    %30 = arith.addf %28, %29 : vector<1x128xf32>
    %31 = vector.extract_strided_slice %30 {offsets = [0, 0], sizes = [1, 32], strides = [1, 1]} : vector<1x128xf32> to vector<1x32xf32>
    %32 = vector.extract_strided_slice %30 {offsets = [0, 32], sizes = [1, 32], strides = [1, 1]} : vector<1x128xf32> to vector<1x32xf32>
    %33 = vector.extract_strided_slice %30 {offsets = [0, 96], sizes = [1, 32], strides = [1, 1]} : vector<1x128xf32> to vector<1x32xf32>
    %34 = vector.extract_strided_slice %23 {offsets = [0, 64], sizes = [1, 32], strides = [1, 1]} : vector<1x128xf32> to vector<1x32xf32>
    %35 = math.tanh %34 : vector<1x32xf32>
    %36 = arith.mulf %32, %19 : vector<1x32xf32>
    %37 = arith.mulf %31, %35 : vector<1x32xf32>
    %38 = arith.addf %36, %37 : vector<1x32xf32>
    %39 = math.tanh %38 : vector<1x32xf32>
    %40 = arith.mulf %33, %39 : vector<1x32xf32>
    %41 = arith.index_cast %c0_i32 : i32 to index
    %c0_17 = arith.constant 0 : index
    %42 = vector.load %arg9[%41, %c0_17] : memref<8x32xf32, #tpu.memory_space<vmem>>, vector<1x32xf32>
    tpu.vector_store %arg9[%41, %c0_17], %40 {strides = array<i32>} : memref<8x32xf32, #tpu.memory_space<vmem>>, vector<1x32xf32>,
    %c1_i32 = arith.constant 1 : i32
    %43 = arith.index_cast %c1_i32 : i32 to index
    %c0_18 = arith.constant 0 : index
    %44 = vector.load %arg8[%43, %c0_18] : memref<8x128xf32, #tpu.memory_space<vmem>>, vector<1x128xf32>
    %cst_19 = arith.constant dense<0.000000e+00> : vector<1x128xf32>
    %45 = tpu.matmul %40, %18, %cst_19 {dimension_numbers = #tpu.dot_dimension_numbers<[1], [0], [0], [1], [0, 0, 1, 1], [], []>} : vector<1x32xf32>, vector<32x128xf32>, vector<1x128xf32> -> vector<1x128xf32>
    %46 = arith.addf %44, %45 : vector<1x128xf32>
    %cst_20 = arith.constant 5.000000e-01 : f32
    %47 = vector.broadcast %cst_20 : f32 to vector<1x128xf32>
    %48 = arith.mulf %47, %46 : vector<1x128xf32>
    %49 = math.tanh %48 : vector<1x128xf32>
    %cst_21 = arith.constant 5.000000e-01 : f32
    %50 = vector.broadcast %cst_21 : f32 to vector<1x128xf32>
    %51 = arith.mulf %50, %49 : vector<1x128xf32>
    %cst_22 = arith.constant 5.000000e-01 : f32
    %52 = vector.broadcast %cst_22 : f32 to vector<1x128xf32>
    %53 = arith.addf %51, %52 : vector<1x128xf32>
    %54 = vector.extract_strided_slice %53 {offsets = [0, 0], sizes = [1, 32], strides = [1, 1]} : vector<1x128xf32> to vector<1x32xf32>
    %55 = vector.extract_strided_slice %53 {offsets = [0, 32], sizes = [1, 32], strides = [1, 1]} : vector<1x128xf32> to vector<1x32xf32>
    %56 = vector.extract_strided_slice %53 {offsets = [0, 96], sizes = [1, 32], strides = [1, 1]} : vector<1x128xf32> to vector<1x32xf32>
    %57 = vector.extract_strided_slice %46 {offsets = [0, 64], sizes = [1, 32], strides = [1, 1]} : vector<1x128xf32> to vector<1x32xf32>
    %58 = math.tanh %57 : vector<1x32xf32>
    %59 = arith.mulf %55, %38 : vector<1x32xf32>
    %60 = arith.mulf %54, %58 : vector<1x32xf32>
    %61 = arith.addf %59, %60 : vector<1x32xf32>
    %62 = math.tanh %61 : vector<1x32xf32>
    %63 = arith.mulf %56, %62 : vector<1x32xf32>
    %64 = arith.index_cast %c1_i32 : i32 to index
    %c0_23 = arith.constant 0 : index
    %65 = vector.load %arg9[%64, %c0_23] : memref<8x32xf32, #tpu.memory_space<vmem>>, vector<1x32xf32>
    tpu.vector_store %arg9[%64, %c0_23], %63 {strides = array<i32>} : memref<8x32xf32, #tpu.memory_space<vmem>>, vector<1x32xf32>,
    %c2_i32 = arith.constant 2 : i32
    %66 = arith.index_cast %c2_i32 : i32 to index
    %c0_24 = arith.constant 0 : index
    %67 = vector.load %arg8[%66, %c0_24] : memref<8x128xf32, #tpu.memory_space<vmem>>, vector<1x128xf32>
    %cst_25 = arith.constant dense<0.000000e+00> : vector<1x128xf32>
    %68 = tpu.matmul %63, %18, %cst_25 {dimension_numbers = #tpu.dot_dimension_numbers<[1], [0], [0], [1], [0, 0, 1, 1], [], []>} : vector<1x32xf32>, vector<32x128xf32>, vector<1x128xf32> -> vector<1x128xf32>
    %69 = arith.addf %67, %68 : vector<1x128xf32>
    %cst_26 = arith.constant 5.000000e-01 : f32
    %70 = vector.broadcast %cst_26 : f32 to vector<1x128xf32>
    %71 = arith.mulf %70, %69 : vector<1x128xf32>
    %72 = math.tanh %71 : vector<1x128xf32>
    %cst_27 = arith.constant 5.000000e-01 : f32
    %73 = vector.broadcast %cst_27 : f32 to vector<1x128xf32>
    %74 = arith.mulf %73, %72 : vector<1x128xf32>
    %cst_28 = arith.constant 5.000000e-01 : f32
    %75 = vector.broadcast %cst_28 : f32 to vector<1x128xf32>
    %76 = arith.addf %74, %75 : vector<1x128xf32>
    %77 = vector.extract_strided_slice %76 {offsets = [0, 0], sizes = [1, 32], strides = [1, 1]} : vector<1x128xf32> to vector<1x32xf32>
    %78 = vector.extract_strided_slice %76 {offsets = [0, 32], sizes = [1, 32], strides = [1, 1]} : vector<1x128xf32> to vector<1x32xf32>
    %79 = vector.extract_strided_slice %76 {offsets = [0, 96], sizes = [1, 32], strides = [1, 1]} : vector<1x128xf32> to vector<1x32xf32>
    %80 = vector.extract_strided_slice %69 {offsets = [0, 64], sizes = [1, 32], strides = [1, 1]} : vector<1x128xf32> to vector<1x32xf32>
    %81 = math.tanh %80 : vector<1x32xf32>
    %82 = arith.mulf %78, %61 : vector<1x32xf32>
    %83 = arith.mulf %77, %81 : vector<1x32xf32>
    %84 = arith.addf %82, %83 : vector<1x32xf32>
    %85 = math.tanh %84 : vector<1x32xf32>
    %86 = arith.mulf %79, %85 : vector<1x32xf32>
    %87 = arith.index_cast %c2_i32 : i32 to index
    %c0_29 = arith.constant 0 : index
    %88 = vector.load %arg9[%87, %c0_29] : memref<8x32xf32, #tpu.memory_space<vmem>>, vector<1x32xf32>
    tpu.vector_store %arg9[%87, %c0_29], %86 {strides = array<i32>} : memref<8x32xf32, #tpu.memory_space<vmem>>, vector<1x32xf32>,
    %c3_i32 = arith.constant 3 : i32
    %89 = arith.index_cast %c3_i32 : i32 to index
    %c0_30 = arith.constant 0 : index
    %90 = vector.load %arg8[%89, %c0_30] : memref<8x128xf32, #tpu.memory_space<vmem>>, vector<1x128xf32>
    %cst_31 = arith.constant dense<0.000000e+00> : vector<1x128xf32>
    %91 = tpu.matmul %86, %18, %cst_31 {dimension_numbers = #tpu.dot_dimension_numbers<[1], [0], [0], [1], [0, 0, 1, 1], [], []>} : vector<1x32xf32>, vector<32x128xf32>, vector<1x128xf32> -> vector<1x128xf32>
    %92 = arith.addf %90, %91 : vector<1x128xf32>
    %cst_32 = arith.constant 5.000000e-01 : f32
    %93 = vector.broadcast %cst_32 : f32 to vector<1x128xf32>
    %94 = arith.mulf %93, %92 : vector<1x128xf32>
    %95 = math.tanh %94 : vector<1x128xf32>
    %cst_33 = arith.constant 5.000000e-01 : f32
    %96 = vector.broadcast %cst_33 : f32 to vector<1x128xf32>
    %97 = arith.mulf %96, %95 : vector<1x128xf32>
    %cst_34 = arith.constant 5.000000e-01 : f32
    %98 = vector.broadcast %cst_34 : f32 to vector<1x128xf32>
    %99 = arith.addf %97, %98 : vector<1x128xf32>
    %100 = vector.extract_strided_slice %99 {offsets = [0, 0], sizes = [1, 32], strides = [1, 1]} : vector<1x128xf32> to vector<1x32xf32>
    %101 = vector.extract_strided_slice %99 {offsets = [0, 32], sizes = [1, 32], strides = [1, 1]} : vector<1x128xf32> to vector<1x32xf32>
    %102 = vector.extract_strided_slice %99 {offsets = [0, 96], sizes = [1, 32], strides = [1, 1]} : vector<1x128xf32> to vector<1x32xf32>
    %103 = vector.extract_strided_slice %92 {offsets = [0, 64], sizes = [1, 32], strides = [1, 1]} : vector<1x128xf32> to vector<1x32xf32>
    %104 = math.tanh %103 : vector<1x32xf32>
    %105 = arith.mulf %101, %84 : vector<1x32xf32>
    %106 = arith.mulf %100, %104 : vector<1x32xf32>
    %107 = arith.addf %105, %106 : vector<1x32xf32>
    %108 = math.tanh %107 : vector<1x32xf32>
    %109 = arith.mulf %102, %108 : vector<1x32xf32>
    %110 = arith.index_cast %c3_i32 : i32 to index
    %c0_35 = arith.constant 0 : index
    %111 = vector.load %arg9[%110, %c0_35] : memref<8x32xf32, #tpu.memory_space<vmem>>, vector<1x32xf32>
    tpu.vector_store %arg9[%110, %c0_35], %109 {strides = array<i32>} : memref<8x32xf32, #tpu.memory_space<vmem>>, vector<1x32xf32>,
    %c4_i32 = arith.constant 4 : i32
    %112 = arith.index_cast %c4_i32 : i32 to index
    %c0_36 = arith.constant 0 : index
    %113 = vector.load %arg8[%112, %c0_36] : memref<8x128xf32, #tpu.memory_space<vmem>>, vector<1x128xf32>
    %cst_37 = arith.constant dense<0.000000e+00> : vector<1x128xf32>
    %114 = tpu.matmul %109, %18, %cst_37 {dimension_numbers = #tpu.dot_dimension_numbers<[1], [0], [0], [1], [0, 0, 1, 1], [], []>} : vector<1x32xf32>, vector<32x128xf32>, vector<1x128xf32> -> vector<1x128xf32>
    %115 = arith.addf %113, %114 : vector<1x128xf32>
    %cst_38 = arith.constant 5.000000e-01 : f32
    %116 = vector.broadcast %cst_38 : f32 to vector<1x128xf32>
    %117 = arith.mulf %116, %115 : vector<1x128xf32>
    %118 = math.tanh %117 : vector<1x128xf32>
    %cst_39 = arith.constant 5.000000e-01 : f32
    %119 = vector.broadcast %cst_39 : f32 to vector<1x128xf32>
    %120 = arith.mulf %119, %118 : vector<1x128xf32>
    %cst_40 = arith.constant 5.000000e-01 : f32
    %121 = vector.broadcast %cst_40 : f32 to vector<1x128xf32>
    %122 = arith.addf %120, %121 : vector<1x128xf32>
    %123 = vector.extract_strided_slice %122 {offsets = [0, 0], sizes = [1, 32], strides = [1, 1]} : vector<1x128xf32> to vector<1x32xf32>
    %124 = vector.extract_strided_slice %122 {offsets = [0, 32], sizes = [1, 32], strides = [1, 1]} : vector<1x128xf32> to vector<1x32xf32>
    %125 = vector.extract_strided_slice %122 {offsets = [0, 96], sizes = [1, 32], strides = [1, 1]} : vector<1x128xf32> to vector<1x32xf32>
    %126 = vector.extract_strided_slice %115 {offsets = [0, 64], sizes = [1, 32], strides = [1, 1]} : vector<1x128xf32> to vector<1x32xf32>
    %127 = math.tanh %126 : vector<1x32xf32>
    %128 = arith.mulf %124, %107 : vector<1x32xf32>
    %129 = arith.mulf %123, %127 : vector<1x32xf32>
    %130 = arith.addf %128, %129 : vector<1x32xf32>
    %131 = math.tanh %130 : vector<1x32xf32>
    %132 = arith.mulf %125, %131 : vector<1x32xf32>
    %133 = arith.index_cast %c4_i32 : i32 to index
    %c0_41 = arith.constant 0 : index
    %134 = vector.load %arg9[%133, %c0_41] : memref<8x32xf32, #tpu.memory_space<vmem>>, vector<1x32xf32>
    tpu.vector_store %arg9[%133, %c0_41], %132 {strides = array<i32>} : memref<8x32xf32, #tpu.memory_space<vmem>>, vector<1x32xf32>,
    %c5_i32 = arith.constant 5 : i32
    %135 = arith.index_cast %c5_i32 : i32 to index
    %c0_42 = arith.constant 0 : index
    %136 = vector.load %arg8[%135, %c0_42] : memref<8x128xf32, #tpu.memory_space<vmem>>, vector<1x128xf32>
    %cst_43 = arith.constant dense<0.000000e+00> : vector<1x128xf32>
    %137 = tpu.matmul %132, %18, %cst_43 {dimension_numbers = #tpu.dot_dimension_numbers<[1], [0], [0], [1], [0, 0, 1, 1], [], []>} : vector<1x32xf32>, vector<32x128xf32>, vector<1x128xf32> -> vector<1x128xf32>
    %138 = arith.addf %136, %137 : vector<1x128xf32>
    %cst_44 = arith.constant 5.000000e-01 : f32
    %139 = vector.broadcast %cst_44 : f32 to vector<1x128xf32>
    %140 = arith.mulf %139, %138 : vector<1x128xf32>
    %141 = math.tanh %140 : vector<1x128xf32>
    %cst_45 = arith.constant 5.000000e-01 : f32
    %142 = vector.broadcast %cst_45 : f32 to vector<1x128xf32>
    %143 = arith.mulf %142, %141 : vector<1x128xf32>
    %cst_46 = arith.constant 5.000000e-01 : f32
    %144 = vector.broadcast %cst_46 : f32 to vector<1x128xf32>
    %145 = arith.addf %143, %144 : vector<1x128xf32>
    %146 = vector.extract_strided_slice %145 {offsets = [0, 0], sizes = [1, 32], strides = [1, 1]} : vector<1x128xf32> to vector<1x32xf32>
    %147 = vector.extract_strided_slice %145 {offsets = [0, 32], sizes = [1, 32], strides = [1, 1]} : vector<1x128xf32> to vector<1x32xf32>
    %148 = vector.extract_strided_slice %145 {offsets = [0, 96], sizes = [1, 32], strides = [1, 1]} : vector<1x128xf32> to vector<1x32xf32>
    %149 = vector.extract_strided_slice %138 {offsets = [0, 64], sizes = [1, 32], strides = [1, 1]} : vector<1x128xf32> to vector<1x32xf32>
    %150 = math.tanh %149 : vector<1x32xf32>
    %151 = arith.mulf %147, %130 : vector<1x32xf32>
    %152 = arith.mulf %146, %150 : vector<1x32xf32>
    %153 = arith.addf %151, %152 : vector<1x32xf32>
    %154 = math.tanh %153 : vector<1x32xf32>
    %155 = arith.mulf %148, %154 : vector<1x32xf32>
    %156 = arith.index_cast %c5_i32 : i32 to index
    %c0_47 = arith.constant 0 : index
    %157 = vector.load %arg9[%156, %c0_47] : memref<8x32xf32, #tpu.memory_space<vmem>>, vector<1x32xf32>
    tpu.vector_store %arg9[%156, %c0_47], %155 {strides = array<i32>} : memref<8x32xf32, #tpu.memory_space<vmem>>, vector<1x32xf32>,
    %c6_i32 = arith.constant 6 : i32
    %158 = arith.index_cast %c6_i32 : i32 to index
    %c0_48 = arith.constant 0 : index
    %159 = vector.load %arg8[%158, %c0_48] : memref<8x128xf32, #tpu.memory_space<vmem>>, vector<1x128xf32>
    %cst_49 = arith.constant dense<0.000000e+00> : vector<1x128xf32>
    %160 = tpu.matmul %155, %18, %cst_49 {dimension_numbers = #tpu.dot_dimension_numbers<[1], [0], [0], [1], [0, 0, 1, 1], [], []>} : vector<1x32xf32>, vector<32x128xf32>, vector<1x128xf32> -> vector<1x128xf32>
    %161 = arith.addf %159, %160 : vector<1x128xf32>
    %cst_50 = arith.constant 5.000000e-01 : f32
    %162 = vector.broadcast %cst_50 : f32 to vector<1x128xf32>
    %163 = arith.mulf %162, %161 : vector<1x128xf32>
    %164 = math.tanh %163 : vector<1x128xf32>
    %cst_51 = arith.constant 5.000000e-01 : f32
    %165 = vector.broadcast %cst_51 : f32 to vector<1x128xf32>
    %166 = arith.mulf %165, %164 : vector<1x128xf32>
    %cst_52 = arith.constant 5.000000e-01 : f32
    %167 = vector.broadcast %cst_52 : f32 to vector<1x128xf32>
    %168 = arith.addf %166, %167 : vector<1x128xf32>
    %169 = vector.extract_strided_slice %168 {offsets = [0, 0], sizes = [1, 32], strides = [1, 1]} : vector<1x128xf32> to vector<1x32xf32>
    %170 = vector.extract_strided_slice %168 {offsets = [0, 32], sizes = [1, 32], strides = [1, 1]} : vector<1x128xf32> to vector<1x32xf32>
    %171 = vector.extract_strided_slice %168 {offsets = [0, 96], sizes = [1, 32], strides = [1, 1]} : vector<1x128xf32> to vector<1x32xf32>
    %172 = vector.extract_strided_slice %161 {offsets = [0, 64], sizes = [1, 32], strides = [1, 1]} : vector<1x128xf32> to vector<1x32xf32>
    %173 = math.tanh %172 : vector<1x32xf32>
    %174 = arith.mulf %170, %153 : vector<1x32xf32>
    %175 = arith.mulf %169, %173 : vector<1x32xf32>
    %176 = arith.addf %174, %175 : vector<1x32xf32>
    %177 = math.tanh %176 : vector<1x32xf32>
    %178 = arith.mulf %171, %177 : vector<1x32xf32>
    %179 = arith.index_cast %c6_i32 : i32 to index
    %c0_53 = arith.constant 0 : index
    %180 = vector.load %arg9[%179, %c0_53] : memref<8x32xf32, #tpu.memory_space<vmem>>, vector<1x32xf32>
    tpu.vector_store %arg9[%179, %c0_53], %178 {strides = array<i32>} : memref<8x32xf32, #tpu.memory_space<vmem>>, vector<1x32xf32>,
    %c7_i32 = arith.constant 7 : i32
    %181 = arith.index_cast %c7_i32 : i32 to index
    %c0_54 = arith.constant 0 : index
    %182 = vector.load %arg8[%181, %c0_54] : memref<8x128xf32, #tpu.memory_space<vmem>>, vector<1x128xf32>
    %cst_55 = arith.constant dense<0.000000e+00> : vector<1x128xf32>
    %183 = tpu.matmul %178, %18, %cst_55 {dimension_numbers = #tpu.dot_dimension_numbers<[1], [0], [0], [1], [0, 0, 1, 1], [], []>} : vector<1x32xf32>, vector<32x128xf32>, vector<1x128xf32> -> vector<1x128xf32>
    %184 = arith.addf %182, %183 : vector<1x128xf32>
    %cst_56 = arith.constant 5.000000e-01 : f32
    %185 = vector.broadcast %cst_56 : f32 to vector<1x128xf32>
    %186 = arith.mulf %185, %184 : vector<1x128xf32>
    %187 = math.tanh %186 : vector<1x128xf32>
    %cst_57 = arith.constant 5.000000e-01 : f32
    %188 = vector.broadcast %cst_57 : f32 to vector<1x128xf32>
    %189 = arith.mulf %188, %187 : vector<1x128xf32>
    %cst_58 = arith.constant 5.000000e-01 : f32
    %190 = vector.broadcast %cst_58 : f32 to vector<1x128xf32>
    %191 = arith.addf %189, %190 : vector<1x128xf32>
    %192 = vector.extract_strided_slice %191 {offsets = [0, 0], sizes = [1, 32], strides = [1, 1]} : vector<1x128xf32> to vector<1x32xf32>
    %193 = vector.extract_strided_slice %191 {offsets = [0, 32], sizes = [1, 32], strides = [1, 1]} : vector<1x128xf32> to vector<1x32xf32>
    %194 = vector.extract_strided_slice %191 {offsets = [0, 96], sizes = [1, 32], strides = [1, 1]} : vector<1x128xf32> to vector<1x32xf32>
    %195 = vector.extract_strided_slice %184 {offsets = [0, 64], sizes = [1, 32], strides = [1, 1]} : vector<1x128xf32> to vector<1x32xf32>
    %196 = math.tanh %195 : vector<1x32xf32>
    %197 = arith.mulf %193, %176 : vector<1x32xf32>
    %198 = arith.mulf %192, %196 : vector<1x32xf32>
    %199 = arith.addf %197, %198 : vector<1x32xf32>
    %200 = math.tanh %199 : vector<1x32xf32>
    %201 = arith.mulf %194, %200 : vector<1x32xf32>
    %202 = arith.index_cast %c7_i32 : i32 to index
    %c0_59 = arith.constant 0 : index
    %203 = vector.load %arg9[%202, %c0_59] : memref<8x32xf32, #tpu.memory_space<vmem>>, vector<1x32xf32>
    tpu.vector_store %arg9[%202, %c0_59], %201 {strides = array<i32>} : memref<8x32xf32, #tpu.memory_space<vmem>>, vector<1x32xf32>,
    %c8_i32 = arith.constant 8 : i32
    %c0_60 = arith.constant 0 : index
    %c0_61 = arith.constant 0 : index
    %204 = vector.load %arg9[%c0_60, %c0_61] : memref<8x32xf32, #tpu.memory_space<vmem>>, vector<8x32xf32>
    %205 = tpu.iota {dimensions = array<i32: 0>} : vector<8x8xi32>
    %206 = tpu.iota {dimensions = array<i32: 1>} : vector<8x8xi32>
    %207 = arith.addi %205, %206 : vector<8x8xi32>
    %c7_i32_62 = arith.constant 7 : i32
    %208 = vector.broadcast %c7_i32_62 : i32 to vector<8x8xi32>
    %209 = arith.cmpi eq, %207, %208 : vector<8x8xi32>
    %210 = arith.extui %209 : vector<8x8xi1> to vector<8x8xi32>
    %211 = arith.sitofp %210 : vector<8x8xi32> to vector<8x8xf32>
    %cst_63 = arith.constant dense<0.000000e+00> : vector<8x32xf32>
    %212 = tpu.matmul %211, %204, %cst_63 {dimension_numbers = #tpu.dot_dimension_numbers<[1], [0], [0], [1], [0, 0, 1, 1], [], []>} : vector<8x8xf32>, vector<8x32xf32>, vector<8x32xf32> -> vector<8x32xf32>
    %213 = tpu.iota {dimensions = array<i32: 1>} : vector<8x32xi32>
    %c16_i32 = arith.constant 16 : i32
    %214 = vector.broadcast %c16_i32 : i32 to vector<8x32xi32>
    %215 = arith.cmpi slt, %213, %214 : vector<8x32xi32>
    %216 = arith.select %215, %204, %212 : vector<8x32xi1>, vector<8x32xf32>
    %c0_64 = arith.constant 0 : index
    %c0_65 = arith.constant 0 : index
    %217 = vector.load %arg5[%c0_64, %c0_65] : memref<32x128xf32, #tpu.memory_space<vmem>>, vector<32x128xf32>
    %cst_66 = arith.constant dense<0.000000e+00> : vector<8x128xf32>
    %218 = tpu.matmul %216, %217, %cst_66 {dimension_numbers = #tpu.dot_dimension_numbers<[1], [0], [0], [1], [0, 0, 1, 1], [], []>} : vector<8x32xf32>, vector<32x128xf32>, vector<8x128xf32> -> vector<8x128xf32>
    %c0_67 = arith.constant 0 : index
    %c0_68 = arith.constant 0 : index
    %219 = vector.load %arg6[%c0_67, %c0_68] : memref<1x128xf32, #tpu.memory_space<vmem>>, vector<1x128xf32>
    %220 = vector.broadcast %219 : vector<1x128xf32> to vector<8x128xf32>
    %221 = arith.addf %218, %220 : vector<8x128xf32>
    %222 = tpu.iota {dimensions = array<i32: 1>} : vector<8x128xi32>
    %c10_i32 = arith.constant 10 : i32
    %223 = vector.broadcast %c10_i32 : i32 to vector<8x128xi32>
    %224 = arith.cmpi slt, %222, %223 : vector<8x128xi32>
    %cst_69 = arith.constant -1.000000e+30 : f32
    %225 = vector.broadcast %cst_69 : f32 to vector<8x128xf32>
    %226 = arith.select %224, %221, %225 : vector<8x128xi1>, vector<8x128xf32>
    %cst_70 = arith.constant dense<0xFF800000> : vector<8xf32>
    %227 = vector.multi_reduction <maximumf>, %226, %cst_70 [1] : vector<8x128xf32> to vector<8xf32>
    %228 = vector.shape_cast %227 : vector<8xf32> to vector<8x1xf32>
    %229 = vector.broadcast %228 : vector<8x1xf32> to vector<8x128xf32>
    %230 = arith.subf %221, %229 : vector<8x128xf32>
    %231 = math.exp %230 : vector<8x128xf32>
    %cst_71 = arith.constant 0.000000e+00 : f32
    %232 = vector.broadcast %cst_71 : f32 to vector<8x128xf32>
    %233 = arith.select %224, %231, %232 : vector<8x128xi1>, vector<8x128xf32>
    %cst_72 = arith.constant dense<0.000000e+00> : vector<8xf32>
    %234 = vector.multi_reduction <add>, %233, %cst_72 [1] : vector<8x128xf32> to vector<8xf32>
    %235 = vector.shape_cast %234 : vector<8xf32> to vector<8x1xf32>
    %236 = math.log %235 : vector<8x1xf32>
    %237 = vector.broadcast %236 : vector<8x1xf32> to vector<8x128xf32>
    %238 = arith.subf %230, %237 : vector<8x128xf32>
    %c0_73 = arith.constant 0 : index
    %c0_74 = arith.constant 0 : index
    %239 = vector.load %arg7[%c0_73, %c0_74] : memref<8x128xf32, #tpu.memory_space<vmem>>, vector<8x128xf32>
    tpu.vector_store %arg7[%c0_73, %c0_74], %238 {strides = array<i32>} : memref<8x128xf32, #tpu.memory_space<vmem>>, vector<8x128xf32>,
    return
  }
}

</mosaic_0001>

<bundles_post_ra>
// kernel: tpu_custom_call.1
= control target key start
LH: loop header
LB: loop body
LE: loop exit
PB: predicated region body
PF: predicated region fallthrough
CT: control target
= control target key end

     0   :  { %12 = vsyncpa [#allocation5], 0  ;;  %s1860_s0 = inlined_call_operand.vmem [shape: s32[8,1], index: 0, kind: input, shape index: {}]   ;;  %s1861_s1 = inlined_call_operand.vmem [shape: s32[8,1], index: 1, kind: input, shape index: {}]   ;;  %s1862_s2 = inlined_call_operand.hbm [shape: f32[256,128], index: 2, kind: input, shape index: {}]   ;;  %s1863_s3 = inlined_call_operand.vmem [shape: f32[1,128], index: 3, kind: input, shape index: {}]   ;;  %s1864_s4 = inlined_call_operand.vmem [shape: f32[32,128], index: 4, kind: input, shape index: {}]   ;;  %s1865_s5 = inlined_call_operand.hbm [shape: f32[32,128], index: 5, kind: input, shape index: {}]   ;;  %s1866_s6 = inlined_call_operand.vmem [shape: f32[1,128], index: 6, kind: input, shape index: {}]   ;;  %s1867_s7 = inlined_call_operand.hbm [shape: f32[8,128], index: 7, kind: output, shape index: {}]  }
   0x1   :  { %13 = vsyncpa [#allocation8], 0 }
   0x2   :  { %14 = vsyncpa [#allocation6], 0  ;;  %s1626_s24 = smov [#allocation4]   ;;  %s1554_s28 = scalar_lea.hbm %s1862_s2, 4096 }
   0x3   :  { %s24_s25 = sshll.u32 %s1626_s24, 4  ;;  %p1555_p0 = scmp.ne.s32.totalorder %s1862_s2, %s1554_s28  ;;  %s25_s25 = int_to_ptr.vmem [resolvable:$true] %s24_s25 }
   0x4   :  { %p1558_p1 = scmp.lt.u32.totalorder %s1554_s28, %s1862_s2 }
   0x6   :  { %p1560_p2 = pnand %p1558_p1, %p1555_p0 }
   0x8   :  { %1563 = shalt.err (!%p1560_p2)
}
   0x9   :  { %s1564_s10 = scalar_lea.vmem %s25_s25, 4096  ;;  %p1569_p4 = scmp.lt.s32.totalorder %s25_s25, %s25_s25 }
   0xa   :  { %p1565_p3 = scmp.ne.s32.totalorder %s25_s25, %s1564_s10  ;;  %p1570_p5 = scmp.lt.s32.totalorder %s1564_s10, %s1564_s10 }
   0xc   :  { %p1571_p6 = por %p1570_p5, %p1569_p4 }
   0xe   :  { %p1572_p7 = pnand %p1571_p6, %p1565_p3 }
  0x10   :  { %1575 = shalt.err (!%p1572_p7)
}
  0x11   :  { %s1627_s11 = smov 128   ;;  %s1628_s12 = smov 8  }
  0x12   :  { %30 = dma.hbm_to_vmem [thread:$0]  %s1862_s2, 4096, %s25_s25, [#allocation5], %s1627_s11, %s1627_s11, %s1628_s12  }
  0x13   :  { %s1629_s15 = smov [#allocation7]   ;;  %s1576_s19 = scalar_lea.hbm %s1865_s5, 512 }
  0x14   :  { %s40_s16 = sshll.u32 %s1629_s15, 4  ;;  %p1577_p8 = scmp.ne.s32.totalorder %s1865_s5, %s1576_s19  ;;  %s41_s16 = int_to_ptr.vmem [resolvable:$true] %s40_s16 }
  0x15   :  { %p1580_p9 = scmp.lt.u32.totalorder %s1576_s19, %s1865_s5 }
  0x17   :  { %p1582_p10 = pnand %p1580_p9, %p1577_p8 }
  0x19   :  { %1585 = shalt.err (!%p1582_p10)
}
  0x1a   :  { %s1586_s24 = scalar_lea.vmem %s41_s16, 512  ;;  %p1591_p12 = scmp.lt.s32.totalorder %s41_s16, %s41_s16 }
  0x1b   :  { %p1587_p11 = scmp.ne.s32.totalorder %s41_s16, %s1586_s24  ;;  %p1592_p13 = scmp.lt.s32.totalorder %s1586_s24, %s1586_s24 }
  0x1d   :  { %p1593_p0 = por %p1592_p13, %p1591_p12 }
  0x1f   :  { %p1594_p1 = pnand %p1593_p0, %p1587_p11 }
  0x21   :  { %1597 = shalt.err (!%p1594_p1)
}
  0x22   :  { %46 = dma.hbm_to_vmem [thread:$0]  %s1865_s5, 512, %s41_s16, [#allocation8], %s1627_s11, %s1627_s11, %s1628_s12  }
  0x23   :  { %1620 = dma.done.wait [#allocation5], 4096  }
  0x24   :  { %1621 = vsyncadd [#allocation5], 4294963200 }
  0x25   :  { %1622 = dma.done.wait [#allocation8], 512  }
  0x26   :  { %1623 = vsyncadd [#allocation8], 4294966784  ;;  %v1630_v0 = vmov 0   ;;  %v58_v1 = vld [vmem:[%s1860_s0] sm:$0xff]  ;;  %v97_v4 = vld [vmem:[#allocation4 + $0x88] sm:$0xff]  ;;  %v1631_v28 = vmov 0.0|0.0   ;;  %v55_v59 = vlaneseq }
  0x27   :  { %1501 = vset.pattern.permute.xlu0 %v1630_v0  ;;  %v68_v2 = vld [vmem:[%s1861_s1] sm:$0xff]  ;;  %v81_v6 = vld [vmem:[#allocation4 + $0x8] sm:$0xff]  ;;  %v98_v9 = vld [vmem:[#allocation4 + $0x90] sm:$0xff]  ;;  %1436 = vmatprep.subr.bf16.mxu1 %v1631_v28  ;;  %vm1632_vm0 = vmmov 0   ;;  %v1633_v31 = vmov 0.0   ;;  %s1634_s13 = smov 64  }
  0x28   :  { %v96_v3 = vld [vmem:[#allocation4 + $0x80] sm:$0xff]  ;;  %60 = vperm.xlu0 %1501, %v58_v1   ;;  %v99_v10 = vld [vmem:[#allocation4 + $0x98] sm:$0xff]  ;;  %v82_v11 = vld [vmem:[#allocation4 + $0x10] sm:$0xff]  ;;  %1308 = vmatprep.mubr.msk.f32.mxu1 %vm1632_vm0, %v1633_v31  ;;  %v1739_v60 = vand.u32 127, %v55_v59  ;;  %s1635_s14 = smov 32   ;;  %vm296_vm5 = vcmask 253952  }
  0x29   :  { %v80_v5 = vld [vmem:[#allocation4] sm:$0xff]  ;;  %v1404_v7 = vpack.c.bf16 %v97_v4, %v96_v3  ;;  %v1408_v12 = vpack.c.bf16 %v99_v10, %v98_v9  ;;  %v83_v13 = vld [vmem:[#allocation4 + $0x18] sm:$0xff]  ;;  %v101_v15 = vld [vmem:[#allocation4 + $0xa8] sm:$0xff]  ;;  %vm195_vm6 = vcmask 261120   ;;  %vm1012_vm8 = vcmask 64512   ;;  %s1636_s16 = smov [#allocation9]  }
  0x2a   :  { %v1406_v8 = vpack.c.bf16 %v81_v6, %v80_v5  ;;  %v100_v14 = vld [vmem:[#allocation4 + $0xa0] sm:$0xff]  ;;  %v1410_v16 = vpack.c.bf16 %v83_v13, %v82_v11  ;;  %v85_v19 = vld [vmem:[#allocation4 + $0x28] sm:$0xff]  ;;  %v102_v20 = vld [vmem:[#allocation4 + $0xb0] sm:$0xff]  ;;  %v57_v61 = vadd.s32 128, %v1739_v60  ;;  %vm1086_vm9 = vcmp.lt.s32.totalorder %v1739_v60, 16  ;;  %s1192_s17 = sshll.u32 %s1636_s16, 4  ;;  %s1193_s17 = int_to_ptr.vmem [resolvable:$true] %s1192_s17 }
  0x2b   :  { %1405 = vmatprep.subr.bf16.mxu0 %v1404_v7  ;;  %v1412_v17 = vpack.c.bf16 %v101_v15, %v100_v14  ;;  %v84_v18 = vld [vmem:[#allocation4 + $0x20] sm:$0xff]  ;;  %v103_v21 = vld [vmem:[#allocation4 + $0xb8] sm:$0xff]  ;;  %v86_v24 = vld [vmem:[#allocation4 + $0x30] sm:$0xff]  ;;  %vm1172_vm10 = vcmp.lt.s32.totalorder %v1739_v60, 10  ;;  %p1603_p3 = scmp.lt.s32.totalorder %s1193_s17, %s1193_s17 }
  0x2c   :  { %70 = vperm.xlu0 %1501, %v68_v2   ;;  %1407 = vmatpush3.bf16.msra.mxu0 %v1406_v8  ;;  %v1414_v22 = vpack.c.bf16 %v85_v19, %v84_v18  ;;  %v1416_v23 = vpack.c.bf16 %v103_v21, %v102_v20  ;;  %v87_v25 = vld [vmem:[#allocation4 + $0x38] sm:$0xff]  ;;  %v104_v26 = vld [vmem:[#allocation4 + $0xc0] sm:$0xff]  ;;  %v105_v27 = vld [vmem:[#allocation4 + $0xc8] sm:$0xff] }
  0x2d   :  { %1409 = vmatprep.subr.bf16.mxu0 %v1408_v12  ;;  %v190_v29 = vld [vmem:[%s1864_s4] sm:$0xff]  ;;  %v191_v30 = vld [vmem:[%s1864_s4 + $0x8] sm:$0xff]  ;;  %v192_v33 = vld [vmem:[%s1864_s4 + $0x10] sm:$0xff]  ;;  %v1418_v35 = vpack.c.bf16 %v87_v25, %v86_v24  ;;  %v1420_v36 = vpack.c.bf16 %v105_v27, %v104_v26 }
  0x2e   :  { %v1716_v32 = vpack.c.bf16 %v191_v30, %v190_v29  ;;  %v193_v34 = vld [vmem:[%s1864_s4 + $0x18] sm:$0xff]  ;;  %v88_v37 = vld [vmem:[#allocation4 + $0x40] sm:$0xff]  ;;  %v89_v38 = vld [vmem:[#allocation4 + $0x48] sm:$0xff] }
  0x2f   :  { %v1725_v39 = vpack.c.bf16 %v193_v34, %v192_v33  ;;  %v106_v40 = vld [vmem:[#allocation4 + $0xd0] sm:$0xff]  ;;  %v107_v41 = vld [vmem:[#allocation4 + $0xd8] sm:$0xff]  ;;  %v1422_v42 = vpack.c.bf16 %v89_v38, %v88_v37  ;;  %v108_v46 = vld [vmem:[#allocation4 + $0xe0] sm:$0xff] }
  0x30   :  { %1411 = vmatpush3.bf16.msra.mxu0 %v1410_v16  ;;  %1438 = vmatpush3.bf16.msra.mxu1 %v1716_v32  ;;  %v1424_v43 = vpack.c.bf16 %v107_v41, %v106_v40  ;;  %v90_v44 = vld [vmem:[#allocation4 + $0x50] sm:$0xff]  ;;  %v91_v45 = vld [vmem:[#allocation4 + $0x58] sm:$0xff]  ;;  %v109_v47 = vld [vmem:[#allocation4 + $0xe8] sm:$0xff] }
  0x31   :  { %1413 = vmatprep.subr.bf16.mxu0 %v1412_v17  ;;  %1439 = vmatprep.subr.bf16.mxu1 %v1631_v28  ;;  %v1426_v48 = vpack.c.bf16 %v91_v45, %v90_v44  ;;  %v1428_v49 = vpack.c.bf16 %v109_v47, %v108_v46  ;;  %v92_v50 = vld [vmem:[#allocation4 + $0x60] sm:$0xff]  ;;  %v93_v51 = vld [vmem:[#allocation4 + $0x68] sm:$0xff]  ;;  %v110_v52 = vld [vmem:[#allocation4 + $0xf0] sm:$0xff] }
  0x32   :  { %v111_v53 = vld [vmem:[#allocation4 + $0xf8] sm:$0xff]  ;;  %v1430_v54 = vpack.c.bf16 %v93_v51, %v92_v50  ;;  %v94_v56 = vld [vmem:[#allocation4 + $0x70] sm:$0xff]  ;;  %v1206_v9 = vld [vmem:[%s1863_s3] ss:$0 sm:$0xff] }
  0x33   :  { %v1432_v55 = vpack.c.bf16 %v111_v53, %v110_v52  ;;  %v95_v57 = vld [vmem:[#allocation4 + $0x78] sm:$0xff] }
  0x34   :  { %1415 = vmatpush3.bf16.msra.mxu0 %v1414_v22  ;;  %1441 = vmatpush3.bf16.msra.mxu1 %v1725_v39  ;;  %v1434_v58 = vpack.c.bf16 %v95_v57, %v94_v56 }
  0x35   :  { %1417 = vmatprep.subr.bf16.mxu0 %v1416_v23  ;;  %1442 = vmatprep.subr.bf16.mxu1 %v1631_v28 }
  0x37   :  { %1309 = vmatmul.mubr.f32.vlgmr.msra.gmra.mrb[0].mxu1 %v1633_v31 }
  0x38   :  { %1419 = vmatpush3.bf16.msra.mxu0 %v1418_v35  ;;  %1444 = vmatpush3.bf16.msra.mxu1 %v1716_v32 }
  0x39   :  { %1421 = vmatprep.subr.bf16.mxu0 %v1420_v36  ;;  %1445 = vmatprep.subr.bf16.mxu1 %v1631_v28 }
  0x3a   :  { %1319 = vmatprep.mubr.msk.f32.mxu1 %vm1632_vm0, %v1633_v31 }
  0x3c   :  { %1423 = vmatpush3.bf16.msra.mxu0 %v1422_v42  ;;  %1447 = vmatpush3.bf16.msra.mxu1 %v1725_v39 }
  0x3d   :  { %1425 = vmatprep.subr.bf16.mxu0 %v1424_v43  ;;  %1448 = vmatprep.subr.bf16.mxu1 %v1631_v28 }
  0x40   :  { %1427 = vmatpush3.bf16.msra.mxu0 %v1426_v48 }
  0x41   :  { %1429 = vmatprep.subr.bf16.mxu0 %v1428_v49 }
  0x44   :  { %1431 = vmatpush3.bf16.msra.mxu0 %v1430_v54 }
  0x45   :  { %1433 = vmatprep.subr.bf16.mxu0 %v1432_v55 }
  0x48   :  { %1435 = vmatpush3.bf16.msra.mxu0 %v1434_v58 }
  0x49   :  { %1460 = vmatprep.subr.bf16.mxu0 %v1631_v28 }
  0xa7   :  { %v61_v62 = vpop.permute.xlu0 %60 }
  0xa8   :  { %vm62_vm1 = vcmp.eq.s32.totalorder %v1739_v60, %v61_v62  ;;  %vm63_vm2 = vcmp.eq.s32.totalorder %v57_v61, %v61_v62 }
  0xa9   :  { %v1202_v0 = vsel %vm62_vm1, 1.0, %v1633_v31  ;;  %v1203_v2 = vsel %vm63_vm2, 1.0, %v1633_v31 }
  0xab   :  { %v71_v63 = vpop.permute.xlu0 %70 }
  0xac   :  { %vm72_vm3 = vcmp.eq.s32.totalorder %v1739_v60, %v71_v63  ;;  %vm73_vm4 = vcmp.eq.s32.totalorder %v57_v61, %v71_v63 }
  0xad   :  { %v1204_v1 = vsel %vm72_vm3, 1.0, %v1633_v31  ;;  %v1205_v3 = vsel %vm73_vm4, 1.0, %v1633_v31 }
  0xae   :  { %v78_v4 = vadd.f32 %v1204_v1, %v1202_v0  ;;  %v79_v5 = vadd.f32 %v1205_v3, %v1203_v2 }
  0xb0   :  { %183 = vmatprep.mubr.f32.mxu0 %v79_v5 }
  0xb1   :  { %184 = vmatmul.mubr.f32.vlgmr.msra.gmra.mrb[0].mxu0 %v78_v4 }
  0xb2   :  { %1462 = vmatpush3.bf16.msra.mxu0 %v1716_v32  ;;  %1352 = vmatprep.mubr.msk.f32.mxu0 %vm1632_vm0, %v1633_v31 }
  0xb3   :  { %1463 = vmatprep.subr.bf16.mxu0 %v1631_v28 }
  0xb6   :  { %1465 = vmatpush3.bf16.msra.mxu0 %v1725_v39 }
  0xb7   :  { %1472 = vmatprep.subr.bf16.mxu0 %v1631_v28 }
 0x10a   :  { %v265_v6 = vpop.f32.mrb[0].mxu1 }
 0x10b   :  { %v1310_v7 = vpop.f32.mrb[1].mxu1 }
 0x184   :  { %v1250_v8 = vpop.f32.mrb[0].mxu0 }
 0x185   :  { %v1251_v10 = vpop.f32.mrb[1].mxu0 }
 0x186   :  { %v1252_v11 = vadd.f32 %v1251_v10, %v1250_v8 }
 0x188   :  { %v186_v12 = vadd.f32 %v1252_v11, %v1206_v9 }
 0x18a   :  { %189 = vst [vmem:[#allocation2] sm:$0xff] %v186_v12 }
 0x191   :  { %v194_v13 = vld [vmem:[#allocation2] sm:$0x1]  ;;  %v298_v30 = vld [vmem:[#allocation2 + $0x1] sm:$0x1]  ;;  %v399_v51 = vld [vmem:[#allocation2 + $0x2] sm:$0x1] }
 0x192   :  { %v269_v14 = vadd.f32 %v265_v6, %v194_v13  ;;  %v500_v7 = vld [vmem:[#allocation2 + $0x3] sm:$0x1] }
 0x194   :  { %1502 = vtanh.f32 %v269_v14  ;;  %v270_v16 = vmul.f32 0.5, %v269_v14 }
 0x196   :  { %1504 = vtanh.f32 %v270_v16 }
 0x19e   :  { %v1503_v15 = vpop.eup %1502 }
 0x19f   :  { %277 = vrot.lane.b32.xlu1 %v1503_v15, %s1634_s13 }
 0x1a0   :  { %v1505_v17 = vpop.eup %1504 }
 0x1a1   :  { %v272_v18 = vmul.f32 0.5, %v1505_v17 }
 0x1a3   :  { %v273_v19 = vadd.f32 0.5, %v272_v18 }
 0x1a5   :  { %v275_v22 = vmul.f32 0.0, %v273_v19 }
 0x211   :  { %v278_v20 = vpop.permute.xlu1 %277 }
 0x212   :  { %v280_v21 = vmul.f32 %v278_v20, %v273_v19 }
 0x214   :  { %282 = vrot.lane.b32.xlu1 %v280_v21, %s1635_s14 }
 0x286   :  { %v283_v23 = vpop.permute.xlu1 %282 }
 0x287   :  { %v285_v24 = vadd.f32 %v283_v23, %v275_v22 }
 0x289   :  { %1506 = vtanh.f32 %v285_v24 }
 0x293   :  { %v1507_v25 = vpop.eup %1506 }
 0x294   :  { %288 = vrot.lane.b32.xlu0 %v1507_v25, %s1634_s13  ;;  %v601_v25 = vld [vmem:[#allocation2 + $0x4] sm:$0x1] }
 0x306   :  { %v289_v26 = vpop.permute.xlu0 %288 }
 0x307   :  { %v291_v27 = vmul.f32 %v289_v26, %v273_v19 }
 0x309   :  { %293 = vrot.lane.b32.xlu1 %v291_v27, %s1635_s14 }
 0x37b   :  { %v294_v29 = vpop.permute.xlu1 %293 }
 0x37c   :  { %297 = vst.msk [vmem:[#allocation3] sm:$0x1] %vm296_vm5, %v294_v29  ;;  %1320 = vmatmul.mubr.msk.f32.vlgmr.msra.gmra.mrb[2].mxu1 %vm195_vm6, %v294_v29 }
 0x37d   :  { %1450 = vmatpush3.bf16.msra.mxu1 %v1716_v32  ;;  %1330 = vmatprep.mubr.msk.f32.mxu1 %vm1632_vm0, %v1633_v31 }
 0x37e   :  { %1451 = vmatprep.subr.bf16.mxu1 %v1631_v28 }
 0x381   :  { %1453 = vmatpush3.bf16.msra.mxu1 %v1725_v39 }
 0x382   :  { %1454 = vmatprep.subr.bf16.mxu1 %v1631_v28 }
 0x44f   :  { %v367_v33 = vpop.f32.mrb[2].mxu1 }
 0x450   :  { %v371_v34 = vadd.f32 %v367_v33, %v298_v30  ;;  %v1321_v35 = vpop.f32.mrb[3].mxu1 }
 0x452   :  { %1508 = vtanh.f32 %v371_v34  ;;  %v372_v37 = vmul.f32 0.5, %v371_v34 }
 0x454   :  { %1510 = vtanh.f32 %v372_v37 }
 0x45c   :  { %v1509_v36 = vpop.eup %1508 }
 0x45d   :  { %379 = vrot.lane.b32.xlu0 %v1509_v36, %s1634_s13 }
 0x45e   :  { %v1511_v38 = vpop.eup %1510 }
 0x45f   :  { %v374_v40 = vmul.f32 0.5, %v1511_v38 }
 0x461   :  { %v375_v41 = vadd.f32 0.5, %v374_v40 }
 0x463   :  { %v377_v44 = vmul.f32 %v375_v41, %v285_v24 }
 0x4cf   :  { %v380_v42 = vpop.permute.xlu0 %379 }
 0x4d0   :  { %v382_v43 = vmul.f32 %v380_v42, %v375_v41 }
 0x4d2   :  { %384 = vrot.lane.b32.xlu1 %v382_v43, %s1635_s14 }
 0x544   :  { %v385_v45 = vpop.permute.xlu1 %384 }
 0x545   :  { %v387_v46 = vadd.f32 %v385_v45, %v377_v44 }
 0x547   :  { %1512 = vtanh.f32 %v387_v46 }
 0x551   :  { %v1513_v47 = vpop.eup %1512 }
 0x552   :  { %390 = vrot.lane.b32.xlu0 %v1513_v47, %s1634_s13  ;;  %v702_v47 = vld [vmem:[#allocation2 + $0x5] sm:$0x1] }
 0x5c4   :  { %v391_v48 = vpop.permute.xlu0 %390 }
 0x5c5   :  { %v393_v49 = vmul.f32 %v391_v48, %v375_v41 }
 0x5c7   :  { %395 = vrot.lane.b32.xlu1 %v393_v49, %s1635_s14 }
 0x639   :  { %v396_v50 = vpop.permute.xlu1 %395 }
 0x63a   :  { %398 = vst.msk [vmem:[#allocation3 + $0x1] sm:$0x1] %vm296_vm5, %v396_v50  ;;  %1331 = vmatmul.mubr.msk.f32.vlgmr.msra.gmra.mrb[4].mxu1 %vm195_vm6, %v396_v50 }
 0x63b   :  { %1456 = vmatpush3.bf16.msra.mxu1 %v1716_v32  ;;  %1341 = vmatprep.mubr.msk.f32.mxu1 %vm1632_vm0, %v1633_v31 }
 0x63c   :  { %1457 = vmatprep.subr.bf16.mxu1 %v1631_v28 }
 0x63f   :  { %1459 = vmatpush3.bf16.msra.mxu1 %v1725_v39 }
 0x640   :  { %1466 = vmatprep.subr.bf16.mxu1 %v1631_v28 }
 0x70d   :  { %v468_v52 = vpop.f32.mrb[4].mxu1 }
 0x70e   :  { %v472_v53 = vadd.f32 %v468_v52, %v399_v51  ;;  %v1332_v54 = vpop.f32.mrb[5].mxu1 }
 0x710   :  { %1514 = vtanh.f32 %v472_v53  ;;  %v473_v56 = vmul.f32 0.5, %v472_v53 }
 0x712   :  { %1516 = vtanh.f32 %v473_v56 }
 0x71a   :  { %v1515_v55 = vpop.eup %1514 }
 0x71b   :  { %480 = vrot.lane.b32.xlu0 %v1515_v55, %s1634_s13 }
 0x71c   :  { %v1517_v57 = vpop.eup %1516 }
 0x71d   :  { %v475_v58 = vmul.f32 0.5, %v1517_v57 }
 0x71f   :  { %v476_v61 = vadd.f32 0.5, %v475_v58 }
 0x721   :  { %v478_v0 = vmul.f32 %v476_v61, %v387_v46 }
 0x78d   :  { %v481_v62 = vpop.permute.xlu0 %480 }
 0x78e   :  { %v483_v63 = vmul.f32 %v481_v62, %v476_v61 }
 0x790   :  { %485 = vrot.lane.b32.xlu1 %v483_v63, %s1635_s14 }
 0x802   :  { %v486_v1 = vpop.permute.xlu1 %485 }
 0x803   :  { %v488_v2 = vadd.f32 %v486_v1, %v478_v0  ;;  %v803_v1 = vld [vmem:[#allocation2 + $0x6] sm:$0x1] }
 0x805   :  { %1518 = vtanh.f32 %v488_v2 }
 0x80f   :  { %v1519_v3 = vpop.eup %1518 }
 0x810   :  { %491 = vrot.lane.b32.xlu0 %v1519_v3, %s1634_s13 }
 0x882   :  { %v492_v4 = vpop.permute.xlu0 %491 }
 0x883   :  { %v494_v5 = vmul.f32 %v492_v4, %v476_v61 }
 0x885   :  { %496 = vrot.lane.b32.xlu1 %v494_v5, %s1635_s14 }
 0x8f7   :  { %v497_v6 = vpop.permute.xlu1 %496 }
 0x8f8   :  { %499 = vst.msk [vmem:[#allocation3 + $0x2] sm:$0x1] %vm296_vm5, %v497_v6  ;;  %1342 = vmatmul.mubr.msk.f32.vlgmr.msra.gmra.mrb[6].mxu1 %vm195_vm6, %v497_v6 }
 0x8f9   :  { %1468 = vmatpush3.bf16.msra.mxu1 %v1716_v32  ;;  %1363 = vmatprep.mubr.msk.f32.mxu1 %vm1632_vm0, %v1633_v31 }
 0x8fa   :  { %1469 = vmatprep.subr.bf16.mxu1 %v1631_v28 }
 0x8fd   :  { %1471 = vmatpush3.bf16.msra.mxu1 %v1725_v39 }
 0x8fe   :  { %1478 = vmatprep.subr.bf16.mxu1 %v1631_v28 }
 0x9cb   :  { %v569_v8 = vpop.f32.mrb[6].mxu1 }
 0x9cc   :  { %v573_v9 = vadd.f32 %v569_v8, %v500_v7  ;;  %v1343_v10 = vpop.f32.mrb[7].mxu1 }
 0x9ce   :  { %1520 = vtanh.f32 %v573_v9  ;;  %v574_v12 = vmul.f32 0.5, %v573_v9 }
 0x9d0   :  { %1522 = vtanh.f32 %v574_v12 }
 0x9d8   :  { %v1521_v11 = vpop.eup %1520 }
 0x9d9   :  { %581 = vrot.lane.b32.xlu0 %v1521_v11, %s1634_s13 }
 0x9da   :  { %v1523_v13 = vpop.eup %1522 }
 0x9db   :  { %v576_v14 = vmul.f32 0.5, %v1523_v13 }
 0x9dd   :  { %v577_v15 = vadd.f32 0.5, %v576_v14 }
 0x9df   :  { %v579_v18 = vmul.f32 %v577_v15, %v488_v2 }
 0xa4b   :  { %v582_v16 = vpop.permute.xlu0 %581 }
 0xa4c   :  { %v584_v17 = vmul.f32 %v582_v16, %v577_v15 }
 0xa4e   :  { %586 = vrot.lane.b32.xlu1 %v584_v17, %s1635_s14 }
 0xac0   :  { %v587_v19 = vpop.permute.xlu1 %586 }
 0xac1   :  { %v589_v20 = vadd.f32 %v587_v19, %v579_v18  ;;  %v904_v19 = vld [vmem:[#allocation2 + $0x7] sm:$0x1] }
 0xac3   :  { %1524 = vtanh.f32 %v589_v20 }
 0xacd   :  { %v1525_v21 = vpop.eup %1524 }
 0xace   :  { %592 = vrot.lane.b32.xlu0 %v1525_v21, %s1634_s13 }
 0xb40   :  { %v593_v22 = vpop.permute.xlu0 %592 }
 0xb41   :  { %v595_v23 = vmul.f32 %v593_v22, %v577_v15 }
 0xb43   :  { %597 = vrot.lane.b32.xlu1 %v595_v23, %s1635_s14 }
 0xbb5   :  { %v598_v24 = vpop.permute.xlu1 %597 }
 0xbb6   :  { %600 = vst.msk [vmem:[#allocation3 + $0x3] sm:$0x1] %vm296_vm5, %v598_v24  ;;  %1353 = vmatmul.mubr.msk.f32.vlgmr.msra.gmra.mrb[2].mxu0 %vm195_vm6, %v598_v24 }
 0xbb7   :  { %1474 = vmatpush3.bf16.msra.mxu0 %v1716_v32  ;;  %1374 = vmatprep.mubr.msk.f32.mxu0 %vm1632_vm0, %v1633_v31 }
 0xbb8   :  { %1475 = vmatprep.subr.bf16.mxu0 %v1631_v28 }
 0xbbb   :  { %1477 = vmatpush3.bf16.msra.mxu0 %v1725_v39 }
 0xbbc   :  { %1388 = vmatprep.subr.mxu0 %v1633_v31 }
 0xc89   :  { %v670_v26 = vpop.f32.mrb[2].mxu0 }
 0xc8a   :  { %v674_v27 = vadd.f32 %v670_v26, %v601_v25  ;;  %v1354_v29 = vpop.f32.mrb[3].mxu0 }
 0xc8c   :  { %1526 = vtanh.f32 %v674_v27  ;;  %v675_v33 = vmul.f32 0.5, %v674_v27 }
 0xc8e   :  { %1528 = vtanh.f32 %v675_v33 }
 0xc96   :  { %v1527_v30 = vpop.eup %1526 }
 0xc97   :  { %682 = vrot.lane.b32.xlu0 %v1527_v30, %s1634_s13 }
 0xc98   :  { %v1529_v34 = vpop.eup %1528 }
 0xc99   :  { %v677_v35 = vmul.f32 0.5, %v1529_v34 }
 0xc9b   :  { %v678_v36 = vadd.f32 0.5, %v677_v35 }
 0xc9d   :  { %v680_v40 = vmul.f32 %v678_v36, %v589_v20 }
 0xd09   :  { %v683_v37 = vpop.permute.xlu0 %682 }
 0xd0a   :  { %v685_v38 = vmul.f32 %v683_v37, %v678_v36  ;;  %v1088_v37 = vld [vmem:[#allocation7] sm:$0xff] }
 0xd0c   :  { %687 = vrot.lane.b32.xlu1 %v685_v38, %s1635_s14  ;;  %v1089_v38 = vld [vmem:[#allocation7 + $0x8] sm:$0xff] }
 0xd7e   :  { %v688_v41 = vpop.permute.xlu1 %687 }
 0xd7f   :  { %v690_v42 = vadd.f32 %v688_v41, %v680_v40  ;;  %v1090_v40 = vld [vmem:[#allocation7 + $0x10] sm:$0xff] }
 0xd81   :  { %1530 = vtanh.f32 %v690_v42 }
 0xd8b   :  { %v1531_v43 = vpop.eup %1530 }
 0xd8c   :  { %693 = vrot.lane.b32.xlu0 %v1531_v43, %s1634_s13  ;;  %v1091_v43 = vld [vmem:[#allocation7 + $0x18] sm:$0xff] }
 0xdfe   :  { %v694_v44 = vpop.permute.xlu0 %693 }
 0xdff   :  { %v696_v45 = vmul.f32 %v694_v44, %v678_v36 }
 0xe01   :  { %698 = vrot.lane.b32.xlu1 %v696_v45, %s1635_s14  ;;  %v1488_v45 = vpack.c.bf16 %v1091_v43, %v1090_v40 }
 0xe73   :  { %v699_v46 = vpop.permute.xlu1 %698 }
 0xe74   :  { %701 = vst.msk [vmem:[#allocation3 + $0x4] sm:$0x1] %vm296_vm5, %v699_v46  ;;  %1364 = vmatmul.mubr.msk.f32.vlgmr.msra.gmra.mrb[8].mxu1 %vm195_vm6, %v699_v46  ;;  %v1007_v46 = vshrl.u32 %v55_v59, 7  ;;  %v1216_v59 = vld [vmem:[%s1866_s6] ss:$0 sm:$0xff]  ;;  %s1598_s6 = scalar_lea.vmem %s1193_s17, 128 }
 0xe75   :  { %1480 = vmatpush3.bf16.msra.mxu1 %v1716_v32  ;;  %1385 = vmatprep.mubr.msk.f32.mxu1 %vm1632_vm0, %v1633_v31  ;;  %p1599_p2 = scmp.ne.s32.totalorder %s1193_s17, %s1598_s6  ;;  %p1604_p4 = scmp.lt.s32.totalorder %s1598_s6, %s1598_s6 }
 0xe76   :  { %1481 = vmatprep.subr.bf16.mxu1 %v1631_v28 }
 0xe77   :  { %p1605_p5 = por %p1604_p4, %p1603_p3 }
 0xe79   :  { %1483 = vmatpush3.bf16.msra.mxu1 %v1725_v39  ;;  %p1606_p6 = pnand %p1605_p5, %p1599_p2 }
 0xe7a   :  { %1484 = vmatprep.subr.bf16.mxu1 %v1631_v28 }
 0xf47   :  { %v771_v48 = vpop.f32.mrb[8].mxu1 }
 0xf48   :  { %v775_v49 = vadd.f32 %v771_v48, %v702_v47  ;;  %v1365_v50 = vpop.f32.mrb[9].mxu1  ;;  %v1008_v48 = vadd.s32 %v1007_v46, %v1739_v60 }
 0xf4a   :  { %1532 = vtanh.f32 %v775_v49  ;;  %v776_v52 = vmul.f32 0.5, %v775_v49  ;;  %vm1009_vm7 = vcmp.eq.s32.totalorder %v1008_v48, 7 }
 0xf4b   :  { %v1214_v49 = vsel %vm1009_vm7, 1.0, %v1633_v31 }
 0xf4c   :  { %1534 = vtanh.f32 %v776_v52 }
 0xf54   :  { %v1533_v51 = vpop.eup %1532 }
 0xf55   :  { %783 = vrot.lane.b32.xlu0 %v1533_v51, %s1634_s13 }
 0xf56   :  { %v1535_v32 = vpop.eup %1534 }
 0xf57   :  { %v778_v53 = vmul.f32 0.5, %v1535_v32 }
 0xf59   :  { %v779_v54 = vadd.f32 0.5, %v778_v53 }
 0xf5b   :  { %v781_v39 = vmul.f32 %v779_v54, %v690_v42  ;;  %v1485_v42 = vpack.c.bf16 %v1089_v38, %v1088_v37 }
 0xfc7   :  { %v784_v55 = vpop.permute.xlu0 %783 }
 0xfc8   :  { %v786_v56 = vmul.f32 %v784_v55, %v779_v54 }
 0xfca   :  { %788 = vrot.lane.b32.xlu1 %v786_v56, %s1635_s14 }
0x103c   :  { %v789_v57 = vpop.permute.xlu1 %788 }
0x103d   :  { %v791_v58 = vadd.f32 %v789_v57, %v781_v39 }
0x103f   :  { %1536 = vtanh.f32 %v791_v58 }
0x1049   :  { %v1537_v61 = vpop.eup %1536 }
0x104a   :  { %794 = vrot.lane.b32.xlu0 %v1537_v61, %s1634_s13 }
0x10bc   :  { %v795_v62 = vpop.permute.xlu0 %794 }
0x10bd   :  { %v797_v63 = vmul.f32 %v795_v62, %v779_v54 }
0x10bf   :  { %799 = vrot.lane.b32.xlu1 %v797_v63, %s1635_s14 }
0x1131   :  { %v800_v0 = vpop.permute.xlu1 %799 }
0x1132   :  { %802 = vst.msk [vmem:[#allocation3 + $0x5] sm:$0x1] %vm296_vm5, %v800_v0  ;;  %1375 = vmatmul.mubr.msk.f32.vlgmr.msra.gmra.mrb[4].mxu0 %vm195_vm6, %v800_v0 }
0x1133   :  { %1390 = vmatprep.mubr.msk.f32.mxu0 %vm1632_vm0, %v1633_v31 }
0x1205   :  { %v872_v2 = vpop.f32.mrb[4].mxu0 }
0x1206   :  { %v876_v3 = vadd.f32 %v872_v2, %v803_v1  ;;  %v1376_v4 = vpop.f32.mrb[5].mxu0 }
0x1208   :  { %1538 = vtanh.f32 %v876_v3  ;;  %v877_v6 = vmul.f32 0.5, %v876_v3 }
0x120a   :  { %1540 = vtanh.f32 %v877_v6 }
0x1212   :  { %v1539_v5 = vpop.eup %1538 }
0x1213   :  { %884 = vrot.lane.b32.xlu0 %v1539_v5, %s1634_s13 }
0x1214   :  { %v1541_v7 = vpop.eup %1540 }
0x1215   :  { %v879_v8 = vmul.f32 0.5, %v1541_v7 }
0x1217   :  { %v880_v9 = vadd.f32 0.5, %v879_v8 }
0x1219   :  { %v882_v12 = vmul.f32 %v880_v9, %v791_v58 }
0x1285   :  { %v885_v10 = vpop.permute.xlu0 %884 }
0x1286   :  { %v887_v11 = vmul.f32 %v885_v10, %v880_v9 }
0x1288   :  { %889 = vrot.lane.b32.xlu1 %v887_v11, %s1635_s14 }
0x12fa   :  { %v890_v13 = vpop.permute.xlu1 %889 }
0x12fb   :  { %v892_v14 = vadd.f32 %v890_v13, %v882_v12 }
0x12fd   :  { %1542 = vtanh.f32 %v892_v14 }
0x1307   :  { %v1543_v15 = vpop.eup %1542 }
0x1308   :  { %895 = vrot.lane.b32.xlu0 %v1543_v15, %s1634_s13 }
0x137a   :  { %v896_v16 = vpop.permute.xlu0 %895 }
0x137b   :  { %v898_v17 = vmul.f32 %v896_v16, %v880_v9 }
0x137d   :  { %900 = vrot.lane.b32.xlu1 %v898_v17, %s1635_s14 }
0x13ef   :  { %v901_v18 = vpop.permute.xlu1 %900 }
0x13f0   :  { %903 = vst.msk [vmem:[#allocation3 + $0x6] sm:$0x1] %vm296_vm5, %v901_v18  ;;  %1386 = vmatmul.mubr.msk.f32.vlgmr.msra.gmra.mrb[10].mxu1 %vm195_vm6, %v901_v18 }
0x13f1   :  { %1401 = vmatprep.mubr.msk.f32.mxu1 %vm1632_vm0, %v1633_v31  ;;  %1486 = vmatpush3.bf16.msra.mxu1 %v1485_v42 }
0x13f2   :  { %1487 = vmatprep.subr.bf16.mxu1 %v1631_v28 }
0x13f5   :  { %1489 = vmatpush3.bf16.msra.mxu1 %v1488_v45 }
0x14c3   :  { %v973_v20 = vpop.f32.mrb[10].mxu1 }
0x14c4   :  { %v977_v21 = vadd.f32 %v973_v20, %v904_v19  ;;  %v1387_v22 = vpop.f32.mrb[11].mxu1 }
0x14c6   :  { %1544 = vtanh.f32 %v977_v21  ;;  %v978_v24 = vmul.f32 0.5, %v977_v21 }
0x14c8   :  { %1546 = vtanh.f32 %v978_v24 }
0x14d0   :  { %v1545_v23 = vpop.eup %1544 }
0x14d1   :  { %985 = vrot.lane.b32.xlu0 %v1545_v23, %s1634_s13 }
0x14d2   :  { %v1547_v25 = vpop.eup %1546 }
0x14d3   :  { %v980_v26 = vmul.f32 0.5, %v1547_v25 }
0x14d5   :  { %v981_v27 = vadd.f32 0.5, %v980_v26 }
0x14d7   :  { %v983_v33 = vmul.f32 %v981_v27, %v892_v14 }
0x1543   :  { %v986_v29 = vpop.permute.xlu0 %985 }
0x1544   :  { %v988_v30 = vmul.f32 %v986_v29, %v981_v27 }
0x1546   :  { %990 = vrot.lane.b32.xlu1 %v988_v30, %s1635_s14 }
0x15b8   :  { %v991_v34 = vpop.permute.xlu1 %990 }
0x15b9   :  { %v993_v35 = vadd.f32 %v991_v34, %v983_v33 }
0x15bb   :  { %1548 = vtanh.f32 %v993_v35 }
0x15c5   :  { %v1549_v36 = vpop.eup %1548 }
0x15c6   :  { %996 = vrot.lane.b32.xlu0 %v1549_v36, %s1634_s13 }
0x1638   :  { %v997_v41 = vpop.permute.xlu0 %996 }
0x1639   :  { %v999_v44 = vmul.f32 %v997_v41, %v981_v27 }
0x163b   :  { %1001 = vrot.lane.b32.xlu1 %v999_v44, %s1635_s14 }
0x16ad   :  { %v1002_v47 = vpop.permute.xlu1 %1001 }
0x16ae   :  { %1004 = vst.msk [vmem:[#allocation3 + $0x7] sm:$0x1] %vm296_vm5, %v1002_v47 }
0x16b5   :  { %v1005_v50 = vld [vmem:[#allocation3] sm:$0xff] }
0x16b6   :  { %1389 = vmatpush3.msra.mxu0 %v1005_v50 }
0x16b7   :  { %1391 = vmatmul.mubr.msk.f32.vlgmr.msra.gmra.mrb[6].mxu0 %vm1012_vm8, %v1214_v49 }
0x178a   :  { %v1082_v51 = vpop.f32.mrb[6].mxu0 }
0x178b   :  { %v1087_v52 = vsel %vm1086_vm9, %v1005_v50, %v1082_v51  ;;  %v1392_v28 = vpop.f32.mrb[7].mxu0 }
0x178c   :  { %1402 = vmatmul.mubr.msk.f32.vlgmr.msra.gmra.mrb[12].mxu1 %vm195_vm6, %v1087_v52 }
0x185f   :  { %v1168_v32 = vpop.f32.mrb[12].mxu1 }
0x1860   :  { %v1169_v53 = vadd.f32 %v1216_v59, %v1168_v32  ;;  %v1403_v31 = vpop.f32.mrb[13].mxu1 }
0x1862   :  { %v1173_v54 = vsel %vm1172_vm10, %v1169_v53, -1e+30 }
0x1863   :  { %1174 = vmax.xlane.f32.xlu0 %v1173_v54 }
0x18f0   :  { %v1175_v55 = vpop.xlane.xlu0 %1174 }
0x18f1   :  { %v1176_v56 = vsub.f32 %v1169_v53, %v1175_v55 }
0x18f3   :  { %v1177_v39 = vmul.f32 1.442695, %v1176_v56 }
0x18f5   :  { %1550 = vpow2.f32 %v1177_v39 }
0x18ff   :  { %v1551_v57 = vpop.eup %1550 }
0x1900   :  { %v1179_v58 = vsel %vm1172_vm10, %v1551_v57, 0.0 }
0x1901   :  { %1180 = vadd.xlane.f32.xlu1 %v1179_v58 }
0x198e   :  { %v1181_v61 = vpop.xlane.xlu1 %1180 }
0x198f   :  { %1552 = vlog2.f32 %v1181_v61 }
0x1999   :  { %v1553_v62 = vpop.eup %1552 }
0x199a   :  { %v1183_v63 = vmul.f32 0.6931472, %v1553_v62 }
0x199c   :  { %v1184_v0 = vsub.f32 %v1176_v56, %v1183_v63 }
0x199e   :  { %1185 = vst [vmem:[#allocation9] sm:$0xff] %v1184_v0 }
0x199f   :  { %1609 = shalt.err (!%p1606_p6)
}
0x19a0   :  { %s1610_s20 = scalar_lea.hbm %s1867_s7, 128 }
0x19a1   :  { %p1611_p7 = scmp.ne.s32.totalorder %s1867_s7, %s1610_s20  ;;  %p1614_p8 = scmp.lt.u32.totalorder %s1610_s20, %s1867_s7 }
0x19a3   :  { %p1616_p9 = pnand %p1614_p8, %p1611_p7 }
0x19a5   :  { %1619 = shalt.err (!%p1616_p9)
}
0x19a6   :  { %1195 = dma.vmem_to_hbm [thread:$0]  %s1193_s17, 128, %s1867_s7, [#allocation6]  }
0x19a7   :  { %1624 = dma.done.wait [#allocation6], 128  }
0x19a8   :  { %1625 = vsyncadd [#allocation6], 4294967168 }
0x19a9   :  { %1199 = vsyncpa [#allocation5], 1 }
0x19aa   :  { %1200 = vsyncpa [#allocation8], 1 }
0x19ab   :  { %1201 = vsyncpa [#allocation6], 1 }

</bundles_post_ra>
